<compile_context>
chip_gen: v7x
topology: tpu7x:2x2x1
jax: 0.10.0
libtpu: 0.0.40
codegen_flags: <defaults>
</compile_context>

<pallas_src>
import functools

import jax
import jax.numpy as jnp
from jax.experimental import pallas as pl
from jax.experimental.pallas import tpu as pltpu


_TB = 512                 # batch tile (sweep 256-1024); 512 fits default scoped VMEM on v5e/v6e/v7x
_MIN_PALLAS_BATCH = 256   # below this, the custom-call launch overhead dominates -> plain XLA dot


def _fc_kernel(x_ref, w_ref, b_ref, o_ref):
    # x_ref: (TB, K) f32   w_ref: (K, Np) bf16   b_ref: (1, Np) f32   o_ref: (TB, Np) f32
    x_bf = x_ref[...].astype(jnp.bfloat16)          # in-kernel cast, hidden under the DMA
    acc = jnp.dot(x_bf, w_ref[...], preferred_element_type=jnp.float32)
    o_ref[...] = acc + b_ref[...]


def prepare_fc_params(fc_w, fc_b):
    """One-time preprocessing of the PyTorch nn.Linear params (hoisted out of the hot path).
    fc_w: (N, K), fc_b: (N,)  ->  (K, Np) bf16 transposed/padded weight, (1, Np) f32 bias.
    Np padded to a multiple of 128 for a lane-dense MXU/store layout; padded columns are zero
    and are sliced off after the kernel. (If num_class grows large, pad to 256 on v6e/v7x.)"""
    N, K = fc_w.shape
    Np = max(128, ((N + 127) // 128) * 128)
    w_t = jnp.zeros((K, Np), jnp.bfloat16).at[:, :N].set(fc_w.T.astype(jnp.bfloat16))
    b_p = jnp.zeros((1, Np), jnp.float32).at[0, :N].set(fc_b.astype(jnp.float32))
    return w_t, b_p


@functools.partial(jax.jit, static_argnames=("num_class", "force_pallas"))
def net_forward(x, w_t, b_p, num_class, force_pallas=False):
    """x: (B, 2048, 1, 1) f32 backbone features (NCHW).
    w_t: (K, Np) bf16 pre-padded/transposed weight, b_p: (1, Np) f32 pre-padded bias
    (both from prepare_fc_params). Returns (B, num_class) f32,
    same math as torch: flatten(x, 1) @ W^T + b."""
    B = x.shape[0]
    K, Np = w_t.shape

    # flatten(start_dim=1): free reshape (B,2048,1,1)->(B,2048); stays f32 (no extra HBM pass).
    feature = x.reshape(B, -1)
    assert feature.shape[1] == K  # trace-time shape check

    if B < _MIN_PALLAS_BATCH and not force_pallas:
        # Launch-overhead-bound regime: plain XLA dot, fusable with the backbone epilogue.
        out = jnp.dot(feature.astype(jnp.bfloat16), w_t,
                      preferred_element_type=jnp.float32) + b_p
        return out[:, :num_class]

    # Batch-tiled Pallas path. Partial edge blocks are fine: rows are independent and
    # out-of-range output rows of the last tile are masked on store / sliced off below.
    tb = _TB if B >= _TB else max(8, ((B + 7) // 8) * 8)   # sublane-aligned tile
    grid_b = pl.cdiv(B, tb)

    cost = pl.CostEstimate(
        flops=2 * B * K * Np,
        transcendentals=0,
        bytes_accessed=B * K * 4 + K * Np * 2 + Np * 4 + B * Np * 4,
    )

    out_padded = pl.pallas_call(
        _fc_kernel,
        out_shape=jax.ShapeDtypeStruct((B, Np), jnp.float32),
        grid_spec=pltpu.PrefetchScalarGridSpec(
            num_scalar_prefetch=0,
            grid=(grid_b,),
            in_specs=[
                # x tile: double-buffered / pipelined over the batch axis.
                pl.BlockSpec((tb, K), lambda i: (i, 0)),
                # weight & bias: constant block every step -> VMEM-resident, single buffer.
                pl.BlockSpec((K, Np), lambda i: (0, 0), pipeline_mode=pl.Buffered(1)),
                pl.BlockSpec((1, Np), lambda i: (0, 0), pipeline_mode=pl.Buffered(1)),
            ],
            out_specs=pl.BlockSpec((tb, Np), lambda i: (i, 0)),
        ),
        compiler_params=pltpu.CompilerParams(
            dimension_semantics=("parallel",),      # v7x: shard batch tiles across 2 TCs
            vmem_limit_bytes=32 * 1024 * 1024,      # headroom on v5e (16 MiB default scoped)
        ),
        cost_estimate=cost,
    )(feature, w_t, b_p)

    return out_padded[:, :num_class]


if __name__ == "__main__":
    key = jax.random.PRNGKey(0)
    k_x, k_w, k_b = jax.random.split(key, 3)

    B = 2
    K = 2048          # ResNet-50 feature dim (fc in_features), fixed by the module spec
    num_class = 10    # e.g. CIFAR-10

    # Backbone output (B, 2048, 1, 1), NCHW, as fed to flatten(start_dim=1).
    x = jax.random.normal(k_x, (B, K, 1, 1), dtype=jnp.float32)

    # Deterministic nn.Linear(2048, num_class) init: U(-1/sqrt(K), 1/sqrt(K)).
    bound = 1.0 / (K ** 0.5)
    fc_w = jax.random.uniform(k_w, (num_class, K), jnp.float32, -bound, bound)
    fc_b = jax.random.uniform(k_b, (num_class,), jnp.float32, -bound, bound)

    # One-time param prep (hoisted out of the forward path).
    w_t, b_p = prepare_fc_params(fc_w, fc_b)
    w_t, b_p = jax.block_until_ready((w_t, b_p))

    # Reference in plain JAX (same math as torch: feature @ W^T + b), f32 throughout.
    ref = x.reshape(B, -1) @ fc_w.T + fc_b

    # 1) Exercise the Pallas kernel (force past the small-batch gate).
    out_pallas = jax.block_until_ready(net_forward(x, w_t, b_p, num_class, force_pallas=True))
    assert out_pallas.shape == (B, num_class)
    # bf16 operands + f32 accumulation -> intentionally loosened tolerance vs the f32 reference.
    assert jnp.allclose(out_pallas, ref, atol=3e-2, rtol=3e-2), \
        float(jnp.max(jnp.abs(out_pallas - ref)))

    # 2) Small-batch fallback path (what production uses at B=2).
    out_fallback = jax.block_until_ready(net_forward(x, w_t, b_p, num_class))
    assert out_fallback.shape == (B, num_class)
    assert jnp.allclose(out_fallback, ref, atol=3e-2, rtol=3e-2), \
        float(jnp.max(jnp.abs(out_fallback - ref)))

    print("KERNEL_OK")
</pallas_src>

<mosaic_0001>
module attributes {stable_mosaic.version = 11 : i64} {
  func.func @_fc_kernel(%arg0: i32, %arg1: memref<8x2048xf32, #tpu.memory_space<vmem>>, %arg2: memref<2048x128xbf16, #tpu.memory_space<vmem>>, %arg3: memref<1x128xf32, #tpu.memory_space<vmem>>, %arg4: memref<8x128xf32, #tpu.memory_space<vmem>>) attributes {dimension_semantics = [#tpu.dimension_semantics<parallel>], iteration_bounds = array<i64: 1>, scalar_prefetch = 0 : i64, scratch_operands = 0 : i64, tpu.core_type = #tpu.core_type<tc>, window_params = [{transform_indices = @transform_0, window_bounds = array<i64: 8, 2048>}, {pipeline_mode = #tpu.pipeline_mode<synchronous>, transform_indices = @transform_1, window_bounds = array<i64: 2048, 128>}, {pipeline_mode = #tpu.pipeline_mode<synchronous>, transform_indices = @transform_2, window_bounds = array<i64: 1, 128>}, {transform_indices = @transform_3, window_bounds = array<i64: 8, 128>}]} {
    %c0 = arith.constant 0 : index
    %c0_0 = arith.constant 0 : index
    %0 = vector.load %arg1[%c0, %c0_0] : memref<8x2048xf32, #tpu.memory_space<vmem>>, vector<8x2048xf32>
    %1 = arith.truncf %0 : vector<8x2048xf32> to vector<8x2048xbf16>
    %c0_1 = arith.constant 0 : index
    %c0_2 = arith.constant 0 : index
    %2 = vector.load %arg2[%c0_1, %c0_2] : memref<2048x128xbf16, #tpu.memory_space<vmem>>, vector<2048x128xbf16>
    %cst = arith.constant dense<0.000000e+00> : vector<8x128xf32>
    %3 = tpu.matmul %1, %2, %cst {dimension_numbers = #tpu.dot_dimension_numbers<[1], [0], [0], [1], [0, 0, 1, 1], [], []>} : vector<8x2048xbf16>, vector<2048x128xbf16>, vector<8x128xf32> -> vector<8x128xf32>
    %c0_3 = arith.constant 0 : index
    %c0_4 = arith.constant 0 : index
    %4 = vector.load %arg3[%c0_3, %c0_4] : memref<1x128xf32, #tpu.memory_space<vmem>>, vector<1x128xf32>
    %5 = vector.broadcast %4 : vector<1x128xf32> to vector<8x128xf32>
    %6 = arith.addf %3, %5 : vector<8x128xf32>
    %c0_5 = arith.constant 0 : index
    %c0_6 = arith.constant 0 : index
    %7 = vector.load %arg4[%c0_5, %c0_6] : memref<8x128xf32, #tpu.memory_space<vmem>>, vector<8x128xf32>
    tpu.vector_store %arg4[%c0_5, %c0_6], %6 {strides = array<i32>} : memref<8x128xf32, #tpu.memory_space<vmem>>, vector<8x128xf32>,
    return
  }
  func.func @transform_0(%arg0: i32) -> (i32, i32) {
    %c0_i32 = arith.constant 0 : i32
    %c0_i32_0 = arith.constant 0 : i32
    return %arg0, %c0_i32 : i32, i32
  }
  func.func @transform_1(%arg0: i32) -> (i32, i32) {
    %c0_i32 = arith.constant 0 : i32
    %c0_i32_0 = arith.constant 0 : i32
    %c0_i32_1 = arith.constant 0 : i32
    return %c0_i32, %c0_i32_0 : i32, i32
  }
  func.func @transform_2(%arg0: i32) -> (i32, i32) {
    %c0_i32 = arith.constant 0 : i32
    %c0_i32_0 = arith.constant 0 : i32
    %c0_i32_1 = arith.constant 0 : i32
    return %c0_i32, %c0_i32_0 : i32, i32
  }
  func.func @transform_3(%arg0: i32) -> (i32, i32) {
    %c0_i32 = arith.constant 0 : i32
    %c0_i32_0 = arith.constant 0 : i32
    return %arg0, %c0_i32 : i32, i32
  }
}

</mosaic_0001>

<bundles_post_ra>
// kernel: net_forward.1
= control target key start
LH: loop header
LB: loop body
LE: loop exit
PB: predicated region body
PF: predicated region fallthrough
CT: control target
= control target key end

     0   :  { %8 = vsyncpa [#allocation3], 0  ;;  %s2215_s0 = inlined_call_operand.vmem [shape: f32[2,2048], index: 0, kind: input, shape index: {}]   ;;  %s2216_s1 = inlined_call_operand.hbm [shape: bf16[2048,128], index: 1, kind: input, shape index: {}]   ;;  %s2217_s2 = inlined_call_operand.vmem [shape: f32[1,128], index: 2, kind: input, shape index: {}]   ;;  %s2218_s3 = inlined_call_operand.hbm [shape: f32[2,128], index: 3, kind: output, shape index: {}]  }
   0x1   :  { %9 = vsyncpa [#allocation4], 0  ;;  %s2095_s12 = smov [#allocation2]   ;;  %s2047_s16 = scalar_lea.hbm %s2216_s1, 16384 }
   0x2   :  { %s17_s13 = sshll.u32 %s2095_s12, 4  ;;  %p2048_p0 = scmp.ne.s32.totalorder %s2216_s1, %s2047_s16  ;;  %s18_s13 = int_to_ptr.vmem [resolvable:$true] %s17_s13 }
   0x3   :  { %p2051_p1 = scmp.lt.u32.totalorder %s2047_s16, %s2216_s1 }
   0x5   :  { %p2053_p2 = pnand %p2051_p1, %p2048_p0 }
   0x7   :  { %2056 = shalt.err (!%p2053_p2)
}
   0x8   :  { %s2057_s21 = scalar_lea.vmem %s18_s13, 16384  ;;  %p2062_p4 = scmp.lt.s32.totalorder %s18_s13, %s18_s13 }
   0x9   :  { %p2058_p3 = scmp.ne.s32.totalorder %s18_s13, %s2057_s21  ;;  %p2063_p5 = scmp.lt.s32.totalorder %s2057_s21, %s2057_s21 }
   0xb   :  { %p2064_p6 = por %p2063_p5, %p2062_p4 }
   0xd   :  { %p2065_p7 = pnand %p2064_p6, %p2058_p3 }
   0xf   :  { %2068 = shalt.err (!%p2065_p7)
}
  0x10   :  { %s2096_s22 = smov 64   ;;  %s2097_s23 = smov 4  }
  0x11   :  { %23 = dma.hbm_to_vmem [thread:$0]  %s2216_s1, 16384, %s18_s13, [#allocation3], %s2096_s22, %s2096_s22, %s2097_s23  }
  0x12   :  { %2091 = dma.done.wait [#allocation3], 16384  }
  0x13   :  { %2092 = vsyncadd [#allocation3], 4294950912  ;;  %v1919_v0 = vld [vmem:[#allocation2 + $0x40] sm:$0xff]   ;;  %v1923_v4 = vld [vmem:[#allocation2 + $0x48] sm:$0xff]   ;;  %v2098_v24 = vmov 1983009808   ;;  %v69_v26 = vlaneseq }
  0x14   :  { %v1920_v1 = vld [vmem:[#allocation2 + $0xc0] sm:$0xff]   ;;  %1736 = vmatprep.subr.bf16.mxu0 %v1919_v0  ;;  %v1924_v5 = vld [vmem:[#allocation2 + $0xc8] sm:$0xff]   ;;  %v1927_v8 = vld [vmem:[#allocation2 + $0x50] sm:$0xff]   ;;  %v67_v25 = vunpack.c.l.s4 %v2098_v24 }
  0x15   :  { %v1921_v2 = vld [vmem:[#allocation2] sm:$0xff]   ;;  %1758 = vmatprep.subr.bf16.mxu1 %v1920_v1  ;;  %v1925_v6 = vld [vmem:[#allocation2 + $0x8] sm:$0xff]   ;;  %v1928_v9 = vld [vmem:[#allocation2 + $0xd0] sm:$0xff]   ;;  %v70_v32 = vshrl.u32 %v69_v26, 7 }
  0x16   :  { %v1922_v3 = vld [vmem:[#allocation2 + $0x80] sm:$0xff]   ;;  %1737 = vmatpush3.bf16.msra.mxu0 %v1921_v2  ;;  %v1926_v7 = vld [vmem:[#allocation2 + $0x88] sm:$0xff]   ;;  %v1929_v10 = vld [vmem:[#allocation2 + $0x10] sm:$0xff]   ;;  %v68_v31 = vunpack.c.0.s8 %v67_v25 }
  0x17   :  { %1759 = vmatpush3.bf16.msra.mxu1 %v1922_v3  ;;  %1738 = vmatprep.subr.bf16.mxu0 %v1923_v4  ;;  %v1930_v11 = vld [vmem:[#allocation2 + $0x90] sm:$0xff]   ;;  %v1931_v12 = vld [vmem:[#allocation2 + $0x58] sm:$0xff]   ;;  %v1935_v16 = vld [vmem:[#allocation2 + $0x60] sm:$0xff]  }
  0x18   :  { %1760 = vmatprep.subr.bf16.mxu1 %v1924_v5  ;;  %v1932_v13 = vld [vmem:[#allocation2 + $0xd8] sm:$0xff]   ;;  %v1936_v17 = vld [vmem:[#allocation2 + $0xe0] sm:$0xff]   ;;  %v1939_v20 = vld [vmem:[#allocation2 + $0x68] sm:$0xff]   ;;  %v2134_v37 = vsub.s32 %v68_v31, %v70_v32 }
  0x19   :  { %v1933_v14 = vld [vmem:[#allocation2 + $0x18] sm:$0xff]   ;;  %v1937_v18 = vld [vmem:[#allocation2 + $0x20] sm:$0xff]   ;;  %v1940_v21 = vld [vmem:[#allocation2 + $0xe8] sm:$0xff]  }
  0x1a   :  { %1739 = vmatpush3.bf16.msra.mxu0 %v1925_v6  ;;  %v1934_v15 = vld [vmem:[#allocation2 + $0x98] sm:$0xff]   ;;  %v1938_v19 = vld [vmem:[#allocation2 + $0xa0] sm:$0xff]   ;;  %v1941_v22 = vld [vmem:[#allocation2 + $0x28] sm:$0xff]  }
  0x1b   :  { %1761 = vmatpush3.bf16.msra.mxu1 %v1926_v7  ;;  %1740 = vmatprep.subr.bf16.mxu0 %v1927_v8  ;;  %v1942_v23 = vld [vmem:[#allocation2 + $0xa8] sm:$0xff]   ;;  %v1943_v27 = vld [vmem:[#allocation2 + $0x70] sm:$0xff]   ;;  %v1947_v33 = vld [vmem:[#allocation2 + $0x78] sm:$0xff]  }
  0x1c   :  { %1762 = vmatprep.subr.bf16.mxu1 %v1928_v9  ;;  %v1944_v28 = vld [vmem:[#allocation2 + $0xf0] sm:$0xff]   ;;  %v1948_v34 = vld [vmem:[#allocation2 + $0xf8] sm:$0xff]   ;;  %v30_v38 = vld [vmem:[%s2215_s0] sm:$0xff] }
  0x1d   :  { %v1945_v29 = vld [vmem:[#allocation2 + $0x30] sm:$0xff]   ;;  %v1949_v35 = vld [vmem:[#allocation2 + $0x38] sm:$0xff]   ;;  %v34_v39 = vld [vmem:[%s2215_s0 + $0x20] sm:$0xff] }
  0x1e   :  { %1741 = vmatpush3.bf16.msra.mxu0 %v1929_v10  ;;  %v1946_v30 = vld [vmem:[#allocation2 + $0xb0] sm:$0xff]   ;;  %v1950_v36 = vld [vmem:[#allocation2 + $0xb8] sm:$0xff]   ;;  %v38_v40 = vld [vmem:[%s2215_s0 + $0x40] sm:$0xff]  ;;  %v62_v42 = vcombine.low %v30_v38, %v34_v39  ;;  %v63_v43 = vcombine.high %v30_v38, %v34_v39 }
  0x1f   :  { %1763 = vmatpush3.bf16.msra.mxu1 %v1930_v11  ;;  %1742 = vmatprep.subr.bf16.mxu0 %v1931_v12  ;;  %v42_v41 = vld [vmem:[%s2215_s0 + $0x60] sm:$0xff]  ;;  %v1955_v62 = vld [vmem:[#allocation2 + $0x148] sm:$0xff]   ;;  %v1959_v2 = vld [vmem:[#allocation2 + $0x150] sm:$0xff]  }
  0x20   :  { %1764 = vmatprep.subr.bf16.mxu1 %v1932_v13  ;;  %v64_v44 = vcombine.low %v38_v40, %v42_v41  ;;  %v65_v45 = vcombine.high %v38_v40, %v42_v41  ;;  %v1951_v46 = vld [vmem:[#allocation2 + $0x140] sm:$0xff]   ;;  %v72_v47 = vrot.slane %v62_v42, %v2134_v37  ;;  %v79_v48 = vrot.slane %v63_v43, %v2134_v37  ;;  %v1956_v63 = vld [vmem:[#allocation2 + $0x1c8] sm:$0xff]   ;;  %v1960_v3 = vld [vmem:[#allocation2 + $0x1d0] sm:$0xff]  }
  0x21   :  { %v1952_v49 = vld [vmem:[#allocation2 + $0x1c0] sm:$0xff]   ;;  %v1957_v0 = vld [vmem:[#allocation2 + $0x108] sm:$0xff]   ;;  %v1961_v4 = vld [vmem:[#allocation2 + $0x110] sm:$0xff]  }
  0x22   :  { %1743 = vmatpush3.bf16.msra.mxu0 %v1933_v14  ;;  %v86_v50 = vrot.slane %v64_v44, %v2134_v37  ;;  %v93_v51 = vrot.slane %v65_v45, %v2134_v37  ;;  %v1953_v56 = vld [vmem:[#allocation2 + $0x100] sm:$0xff]   ;;  %v1958_v1 = vld [vmem:[#allocation2 + $0x188] sm:$0xff]   ;;  %v1962_v5 = vld [vmem:[#allocation2 + $0x190] sm:$0xff]  }
  0x23   :  { %1765 = vmatpush3.bf16.msra.mxu1 %v1934_v15  ;;  %1744 = vmatprep.subr.bf16.mxu0 %v1935_v16  ;;  %v1954_v57 = vld [vmem:[#allocation2 + $0x180] sm:$0xff]   ;;  %v1963_v6 = vld [vmem:[#allocation2 + $0x158] sm:$0xff]   ;;  %v1971_v14 = vld [vmem:[#allocation2 + $0x168] sm:$0xff]  }
  0x24   :  { %1766 = vmatprep.subr.bf16.mxu1 %v1936_v17  ;;  %v95_v52 = vcombine.high %v72_v47, %v86_v50  ;;  %v97_v53 = vcombine.high %v79_v48, %v93_v51  ;;  %v94_v54 = vcombine.low %v72_v47, %v86_v50  ;;  %v96_v55 = vcombine.low %v79_v48, %v93_v51  ;;  %v1964_v7 = vld [vmem:[#allocation2 + $0x1d8] sm:$0xff]   ;;  %v1967_v10 = vld [vmem:[#allocation2 + $0x160] sm:$0xff]   ;;  %v1972_v15 = vld [vmem:[#allocation2 + $0x1e8] sm:$0xff]  }
  0x25   :  { %v1965_v8 = vld [vmem:[#allocation2 + $0x118] sm:$0xff]   ;;  %v1968_v11 = vld [vmem:[#allocation2 + $0x1e0] sm:$0xff]   ;;  %v1973_v16 = vld [vmem:[#allocation2 + $0x128] sm:$0xff]  }
  0x26   :  { %1745 = vmatpush3.bf16.msra.mxu0 %v1937_v18  ;;  %v223_v58 = vpack.c.bf16 %v95_v52, %v95_v52  ;;  %v225_v59 = vpack.c.bf16 %v97_v53, %v97_v53  ;;  %v222_v60 = vpack.c.bf16 %v94_v54, %v94_v54  ;;  %v224_v61 = vpack.c.bf16 %v96_v55, %v96_v55  ;;  %v1966_v9 = vld [vmem:[#allocation2 + $0x198] sm:$0xff]   ;;  %v1969_v12 = vld [vmem:[#allocation2 + $0x120] sm:$0xff]   ;;  %v1974_v17 = vld [vmem:[#allocation2 + $0x1a8] sm:$0xff]  }
  0x27   :  { %1767 = vmatpush3.bf16.msra.mxu1 %v1938_v19  ;;  %1746 = vmatprep.subr.bf16.mxu0 %v1939_v20  ;;  %v1970_v13 = vld [vmem:[#allocation2 + $0x1a0] sm:$0xff]   ;;  %v1975_v18 = vld [vmem:[#allocation2 + $0x170] sm:$0xff]   ;;  %v31_v24 = vld [vmem:[%s2215_s0 + $0x8] sm:$0xff] }
  0x28   :  { %1768 = vmatprep.subr.bf16.mxu1 %v1940_v21  ;;  %1301 = vmatprep.mubr.bf16.mxu0 %v223_v58  ;;  %v1976_v19 = vld [vmem:[#allocation2 + $0x1f0] sm:$0xff]   ;;  %v35_v25 = vld [vmem:[%s2215_s0 + $0x28] sm:$0xff]  ;;  %v1983_v39 = vld [vmem:[#allocation2 + $0x240] sm:$0xff]  }
  0x29   :  { %1341 = vmatprep.mubr.bf16.mxu1 %v225_v59  ;;  %v1977_v20 = vld [vmem:[#allocation2 + $0x130] sm:$0xff]   ;;  %v39_v26 = vld [vmem:[%s2215_s0 + $0x48] sm:$0xff]  ;;  %v1984_v40 = vld [vmem:[#allocation2 + $0x2c0] sm:$0xff]  }
  0x2a   :  { %1747 = vmatpush3.bf16.msra.mxu0 %v1941_v22  ;;  %v1978_v21 = vld [vmem:[#allocation2 + $0x1b0] sm:$0xff]   ;;  %v1979_v22 = vld [vmem:[#allocation2 + $0x178] sm:$0xff]   ;;  %v1985_v45 = vld [vmem:[#allocation2 + $0x200] sm:$0xff]  }
  0x2b   :  { %1769 = vmatpush3.bf16.msra.mxu1 %v1942_v23  ;;  %1748 = vmatprep.subr.bf16.mxu0 %v1943_v27  ;;  %v1980_v23 = vld [vmem:[#allocation2 + $0x1f8] sm:$0xff]   ;;  %v43_v27 = vld [vmem:[%s2215_s0 + $0x68] sm:$0xff]  ;;  %v1991_v55 = vld [vmem:[#allocation2 + $0x250] sm:$0xff]  }
  0x2c   :  { %1770 = vmatprep.subr.bf16.mxu1 %v1944_v28  ;;  %v98_v28 = vcombine.low %v31_v24, %v35_v25  ;;  %v100_v31 = vcombine.low %v39_v26, %v43_v27  ;;  %v101_v32 = vcombine.high %v39_v26, %v43_v27  ;;  %v1987_v51 = vld [vmem:[#allocation2 + $0x248] sm:$0xff]   ;;  %v1994_v58 = vld [vmem:[#allocation2 + $0x290] sm:$0xff]   ;;  %v1995_v59 = vld [vmem:[#allocation2 + $0x258] sm:$0xff]  }
  0x2d   :  { %v1988_v52 = vld [vmem:[#allocation2 + $0x2c8] sm:$0xff]   ;;  %v2016_v27 = vld [vmem:[#allocation2 + $0x3c0] sm:$0xff]  }
  0x2e   :  { %1749 = vmatpush3.bf16.msra.mxu0 %v1945_v29  ;;  %v99_v29 = vcombine.high %v31_v24, %v35_v25  ;;  %v129_v38 = vrot.slane %v101_v32, %v2134_v37  ;;  %v1989_v53 = vld [vmem:[#allocation2 + $0x208] sm:$0xff]  }
  0x2f   :  { %1771 = vmatpush3.bf16.msra.mxu1 %v1946_v30  ;;  %1750 = vmatprep.subr.bf16.mxu0 %v1947_v33  ;;  %v1981_v30 = vld [vmem:[#allocation2 + $0x138] sm:$0xff]   ;;  %v1990_v54 = vld [vmem:[#allocation2 + $0x288] sm:$0xff]  }
  0x30   :  { %1772 = vmatprep.subr.bf16.mxu1 %v1948_v34  ;;  %v1982_v33 = vld [vmem:[#allocation2 + $0x1b8] sm:$0xff]   ;;  %v108_v34 = vrot.slane %v98_v28, %v2134_v37 }
  0x32   :  { %1751 = vmatpush3.bf16.msra.mxu0 %v1949_v35  ;;  %v115_v35 = vrot.slane %v99_v29, %v2134_v37 }
  0x33   :  { %1773 = vmatpush3.bf16.msra.mxu1 %v1950_v36  ;;  %1780 = vmatprep.subr.bf16.mxu0 %v1951_v46  ;;  %v122_v36 = vrot.slane %v100_v31, %v2134_v37  ;;  %v1986_v46 = vld [vmem:[#allocation2 + $0x280] sm:$0xff]  }
  0x34   :  { %1802 = vmatprep.subr.bf16.mxu1 %v1952_v49  ;;  %v133_v42 = vcombine.high %v115_v35, %v129_v38  ;;  %v132_v44 = vcombine.low %v115_v35, %v129_v38  ;;  %v2017_v31 = vld [vmem:[#allocation2 + $0x300] sm:$0xff]   ;;  %v2019_v38 = vld [vmem:[#allocation2 + $0x348] sm:$0xff]  }
  0x35   :  { %1302 = vmatmul.mubr.bf16.vlgmr.msra.gmra.mrb[0].mxu0 %v222_v60  ;;  %v131_v41 = vcombine.high %v108_v34, %v122_v36  ;;  %v130_v43 = vcombine.low %v108_v34, %v122_v36  ;;  %v1996_v60 = vld [vmem:[#allocation2 + $0x2d8] sm:$0xff]   ;;  %v2018_v34 = vld [vmem:[#allocation2 + $0x380] sm:$0xff]  }
  0x36   :  { %1342 = vmatmul.mubr.bf16.vlgmr.msra.gmra.mrb[0].mxu1 %v224_v61  ;;  %1781 = vmatpush3.bf16.msra.mxu0 %v1953_v56  ;;  %v229_v48 = vpack.c.bf16 %v133_v42, %v133_v42  ;;  %v228_v50 = vpack.c.bf16 %v132_v44, %v132_v44  ;;  %v1992_v56 = vld [vmem:[#allocation2 + $0x2d0] sm:$0xff]   ;;  %v1997_v61 = vld [vmem:[#allocation2 + $0x218] sm:$0xff]   ;;  %v2021_v42 = vld [vmem:[#allocation2 + $0x308] sm:$0xff]  }
  0x37   :  { %1803 = vmatpush3.bf16.msra.mxu1 %v1954_v57  ;;  %1782 = vmatprep.subr.bf16.mxu0 %v1955_v62  ;;  %v227_v47 = vpack.c.bf16 %v131_v41, %v131_v41  ;;  %v226_v49 = vpack.c.bf16 %v130_v43, %v130_v43  ;;  %v1993_v57 = vld [vmem:[#allocation2 + $0x210] sm:$0xff]   ;;  %v1998_v62 = vld [vmem:[#allocation2 + $0x298] sm:$0xff]   ;;  %v2020_v41 = vld [vmem:[#allocation2 + $0x3c8] sm:$0xff]  }
  0x38   :  { %1804 = vmatprep.subr.bf16.mxu1 %v1956_v63  ;;  %1421 = vmatprep.mubr.bf16.mxu1 %v229_v48  ;;  %v1999_v63 = vld [vmem:[#allocation2 + $0x260] sm:$0xff]   ;;  %v2022_v43 = vld [vmem:[#allocation2 + $0x388] sm:$0xff]   ;;  %v2023_v44 = vld [vmem:[#allocation2 + $0x350] sm:$0xff]  }
  0x39   :  { %1381 = vmatprep.mubr.bf16.mxu0 %v227_v47  ;;  %v2026_v47 = vld [vmem:[#allocation2 + $0x390] sm:$0xff]   ;;  %v2027_v48 = vld [vmem:[#allocation2 + $0x358] sm:$0xff]  }
  0x3a   :  { %1783 = vmatpush3.bf16.msra.mxu0 %v1957_v0  ;;  %v2000_v0 = vld [vmem:[#allocation2 + $0x2e0] sm:$0xff]  }
  0x3b   :  { %1805 = vmatpush3.bf16.msra.mxu1 %v1958_v1  ;;  %1784 = vmatprep.subr.bf16.mxu0 %v1959_v2  ;;  %v2001_v1 = vld [vmem:[#allocation2 + $0x220] sm:$0xff]  }
  0x3c   :  { %1806 = vmatprep.subr.bf16.mxu1 %v1960_v3  ;;  %v2002_v2 = vld [vmem:[#allocation2 + $0x2a0] sm:$0xff]   ;;  %v2003_v3 = vld [vmem:[#allocation2 + $0x268] sm:$0xff]  }
  0x3e   :  { %1785 = vmatpush3.bf16.msra.mxu0 %v1961_v4  ;;  %v2004_v4 = vld [vmem:[#allocation2 + $0x2e8] sm:$0xff]  }
  0x3f   :  { %1807 = vmatpush3.bf16.msra.mxu1 %v1962_v5  ;;  %1786 = vmatprep.subr.bf16.mxu0 %v1963_v6  ;;  %v2005_v5 = vld [vmem:[#allocation2 + $0x228] sm:$0xff]  }
  0x40   :  { %1808 = vmatprep.subr.bf16.mxu1 %v1964_v7  ;;  %v2006_v6 = vld [vmem:[#allocation2 + $0x2a8] sm:$0xff]   ;;  %v2007_v7 = vld [vmem:[#allocation2 + $0x270] sm:$0xff]  }
  0x42   :  { %1787 = vmatpush3.bf16.msra.mxu0 %v1965_v8  ;;  %v2008_v8 = vld [vmem:[#allocation2 + $0x2f0] sm:$0xff]  }
  0x43   :  { %1809 = vmatpush3.bf16.msra.mxu1 %v1966_v9  ;;  %1788 = vmatprep.subr.bf16.mxu0 %v1967_v10  ;;  %v2009_v9 = vld [vmem:[#allocation2 + $0x230] sm:$0xff]  }
  0x44   :  { %1810 = vmatprep.subr.bf16.mxu1 %v1968_v11  ;;  %v2010_v10 = vld [vmem:[#allocation2 + $0x2b0] sm:$0xff]   ;;  %v2011_v11 = vld [vmem:[#allocation2 + $0x278] sm:$0xff]  }
  0x46   :  { %1789 = vmatpush3.bf16.msra.mxu0 %v1969_v12  ;;  %v2012_v12 = vld [vmem:[#allocation2 + $0x2f8] sm:$0xff]  }
  0x47   :  { %1811 = vmatpush3.bf16.msra.mxu1 %v1970_v13  ;;  %1790 = vmatprep.subr.bf16.mxu0 %v1971_v14  ;;  %v32_v13 = vld [vmem:[%s2215_s0 + $0x10] sm:$0xff]  ;;  %v2013_v14 = vld [vmem:[#allocation2 + $0x238] sm:$0xff]  }
  0x48   :  { %1812 = vmatprep.subr.bf16.mxu1 %v1972_v15  ;;  %v36_v15 = vld [vmem:[%s2215_s0 + $0x30] sm:$0xff] }
  0x4a   :  { %1791 = vmatpush3.bf16.msra.mxu0 %v1973_v16  ;;  %v40_v16 = vld [vmem:[%s2215_s0 + $0x50] sm:$0xff] }
  0x4b   :  { %1813 = vmatpush3.bf16.msra.mxu1 %v1974_v17  ;;  %1792 = vmatprep.subr.bf16.mxu0 %v1975_v18  ;;  %v44_v17 = vld [vmem:[%s2215_s0 + $0x70] sm:$0xff]  ;;  %v2014_v18 = vld [vmem:[#allocation2 + $0x2b8] sm:$0xff]  }
  0x4c   :  { %1814 = vmatprep.subr.bf16.mxu1 %v1976_v19  ;;  %v134_v19 = vcombine.low %v32_v13, %v36_v15 }
  0x4e   :  { %1793 = vmatpush3.bf16.msra.mxu0 %v1977_v20  ;;  %v136_v20 = vcombine.low %v40_v16, %v44_v17  ;;  %v144_v24 = vrot.slane %v134_v19, %v2134_v37 }
  0x4f   :  { %1815 = vmatpush3.bf16.msra.mxu1 %v1978_v21  ;;  %1794 = vmatprep.subr.bf16.mxu0 %v1979_v22  ;;  %v135_v21 = vcombine.high %v32_v13, %v36_v15  ;;  %v137_v22 = vcombine.high %v40_v16, %v44_v17 }
  0x50   :  { %1816 = vmatprep.subr.bf16.mxu1 %v1980_v23  ;;  %v2015_v23 = vld [vmem:[#allocation2 + $0x340] sm:$0xff]   ;;  %v158_v25 = vrot.slane %v136_v20, %v2134_v37 }
  0x51   :  { %v151_v26 = vrot.slane %v135_v21, %v2134_v37  ;;  %v165_v28 = vrot.slane %v137_v22, %v2134_v37 }
  0x52   :  { %1795 = vmatpush3.bf16.msra.mxu0 %v1981_v30  ;;  %v167_v29 = vcombine.high %v144_v24, %v158_v25  ;;  %v166_v30 = vcombine.low %v144_v24, %v158_v25 }
  0x53   :  { %1817 = vmatpush3.bf16.msra.mxu1 %v1982_v33  ;;  %1824 = vmatprep.subr.bf16.mxu0 %v1983_v39  ;;  %v169_v32 = vcombine.high %v151_v26, %v165_v28  ;;  %v168_v33 = vcombine.low %v151_v26, %v165_v28 }
  0x54   :  { %1846 = vmatprep.subr.bf16.mxu1 %v1984_v40  ;;  %v231_v35 = vpack.c.bf16 %v167_v29, %v167_v29  ;;  %v230_v36 = vpack.c.bf16 %v166_v30, %v166_v30 }
  0x55   :  { %1382 = vmatmul.mubr.bf16.vlgmr.msra.gmra.mrb[4].mxu0 %v226_v49  ;;  %v233_v39 = vpack.c.bf16 %v169_v32, %v169_v32  ;;  %v232_v40 = vpack.c.bf16 %v168_v33, %v168_v33  ;;  %v2028_v49 = vld [vmem:[#allocation2 + $0x3d8] sm:$0xff]  }
  0x56   :  { %1422 = vmatmul.mubr.bf16.vlgmr.msra.gmra.mrb[4].mxu1 %v228_v50  ;;  %1825 = vmatpush3.bf16.msra.mxu0 %v1985_v45  ;;  %v2024_v45 = vld [vmem:[#allocation2 + $0x3d0] sm:$0xff]   ;;  %v2029_v50 = vld [vmem:[#allocation2 + $0x318] sm:$0xff]  }
  0x57   :  { %1847 = vmatpush3.bf16.msra.mxu1 %v1986_v46  ;;  %1826 = vmatprep.subr.bf16.mxu0 %v1987_v51  ;;  %v2025_v46 = vld [vmem:[#allocation2 + $0x310] sm:$0xff]   ;;  %v2030_v51 = vld [vmem:[#allocation2 + $0x398] sm:$0xff]  }
  0x58   :  { %1848 = vmatprep.subr.bf16.mxu1 %v1988_v52  ;;  %1461 = vmatprep.mubr.bf16.mxu0 %v231_v35  ;;  %v2031_v52 = vld [vmem:[#allocation2 + $0x360] sm:$0xff]  }
  0x59   :  { %1501 = vmatprep.mubr.bf16.mxu1 %v233_v39 }
  0x5a   :  { %1827 = vmatpush3.bf16.msra.mxu0 %v1989_v53  ;;  %v2032_v53 = vld [vmem:[#allocation2 + $0x3e0] sm:$0xff]  }
  0x5b   :  { %1849 = vmatpush3.bf16.msra.mxu1 %v1990_v54  ;;  %1828 = vmatprep.subr.bf16.mxu0 %v1991_v55  ;;  %v2033_v54 = vld [vmem:[#allocation2 + $0x320] sm:$0xff]  }
  0x5c   :  { %1850 = vmatprep.subr.bf16.mxu1 %v1992_v56  ;;  %v2034_v55 = vld [vmem:[#allocation2 + $0x3a0] sm:$0xff]   ;;  %v2035_v56 = vld [vmem:[#allocation2 + $0x368] sm:$0xff]  }
  0x5e   :  { %1829 = vmatpush3.bf16.msra.mxu0 %v1993_v57  ;;  %v2036_v57 = vld [vmem:[#allocation2 + $0x3e8] sm:$0xff]  }
  0x5f   :  { %1851 = vmatpush3.bf16.msra.mxu1 %v1994_v58  ;;  %1830 = vmatprep.subr.bf16.mxu0 %v1995_v59  ;;  %v2037_v58 = vld [vmem:[#allocation2 + $0x328] sm:$0xff]  }
  0x60   :  { %1852 = vmatprep.subr.bf16.mxu1 %v1996_v60  ;;  %v2038_v59 = vld [vmem:[#allocation2 + $0x3a8] sm:$0xff]   ;;  %v2039_v60 = vld [vmem:[#allocation2 + $0x370] sm:$0xff]  }
  0x62   :  { %1831 = vmatpush3.bf16.msra.mxu0 %v1997_v61  ;;  %v2040_v61 = vld [vmem:[#allocation2 + $0x3f0] sm:$0xff]  }
  0x63   :  { %1853 = vmatpush3.bf16.msra.mxu1 %v1998_v62  ;;  %1832 = vmatprep.subr.bf16.mxu0 %v1999_v63  ;;  %v2041_v62 = vld [vmem:[#allocation2 + $0x330] sm:$0xff]  }
  0x64   :  { %1854 = vmatprep.subr.bf16.mxu1 %v2000_v0  ;;  %v2042_v63 = vld [vmem:[#allocation2 + $0x3b0] sm:$0xff]   ;;  %v2043_v0 = vld [vmem:[#allocation2 + $0x378] sm:$0xff]  }
  0x66   :  { %1833 = vmatpush3.bf16.msra.mxu0 %v2001_v1  ;;  %v2044_v1 = vld [vmem:[#allocation2 + $0x3f8] sm:$0xff]  }
  0x67   :  { %1855 = vmatpush3.bf16.msra.mxu1 %v2002_v2  ;;  %1834 = vmatprep.subr.bf16.mxu0 %v2003_v3  ;;  %v33_v2 = vld [vmem:[%s2215_s0 + $0x18] sm:$0xff] }
  0x68   :  { %1856 = vmatprep.subr.bf16.mxu1 %v2004_v4  ;;  %v37_v3 = vld [vmem:[%s2215_s0 + $0x38] sm:$0xff] }
  0x69   :  { %v41_v4 = vld [vmem:[%s2215_s0 + $0x58] sm:$0xff] }
  0x6a   :  { %1835 = vmatpush3.bf16.msra.mxu0 %v2005_v5  ;;  %v45_v5 = vld [vmem:[%s2215_s0 + $0x78] sm:$0xff] }
  0x6b   :  { %1857 = vmatpush3.bf16.msra.mxu1 %v2006_v6  ;;  %1836 = vmatprep.subr.bf16.mxu0 %v2007_v7  ;;  %v170_v6 = vcombine.low %v33_v2, %v37_v3  ;;  %v171_v7 = vcombine.high %v33_v2, %v37_v3 }
  0x6c   :  { %1858 = vmatprep.subr.bf16.mxu1 %v2008_v8  ;;  %v2045_v8 = vld [vmem:[#allocation2 + $0x338] sm:$0xff]  }
  0x6d   :  { %v187_v13 = vrot.slane %v171_v7, %v2134_v37 }
  0x6e   :  { %1837 = vmatpush3.bf16.msra.mxu0 %v2009_v9  ;;  %v172_v9 = vcombine.low %v41_v4, %v45_v5 }
  0x6f   :  { %1859 = vmatpush3.bf16.msra.mxu1 %v2010_v10  ;;  %1838 = vmatprep.subr.bf16.mxu0 %v2011_v11  ;;  %v173_v10 = vcombine.high %v41_v4, %v45_v5  ;;  %v2046_v11 = vld [vmem:[#allocation2 + $0x3b8] sm:$0xff]  }
  0x70   :  { %1860 = vmatprep.subr.bf16.mxu1 %v2012_v12  ;;  %v180_v12 = vrot.slane %v170_v6, %v2134_v37 }
  0x71   :  { %v201_v15 = vrot.slane %v173_v10, %v2134_v37 }
  0x72   :  { %1839 = vmatpush3.bf16.msra.mxu0 %v2013_v14  ;;  %v194_v14 = vrot.slane %v172_v9, %v2134_v37  ;;  %v1607_v37 = vld [vmem:[%s2217_s2] ss:$0 sm:$0xff] }
  0x73   :  { %1861 = vmatpush3.bf16.msra.mxu1 %v2014_v18  ;;  %1868 = vmatprep.subr.bf16.mxu0 %v2015_v23  ;;  %v205_v17 = vcombine.high %v187_v13, %v201_v15  ;;  %v204_v19 = vcombine.low %v187_v13, %v201_v15 }
  0x74   :  { %1890 = vmatprep.subr.bf16.mxu1 %v2016_v27  ;;  %v203_v16 = vcombine.high %v180_v12, %v194_v14  ;;  %v202_v18 = vcombine.low %v180_v12, %v194_v14 }
  0x75   :  { %1462 = vmatmul.mubr.bf16.vlgmr.msra.gmra.mrb[8].mxu0 %v230_v36  ;;  %v237_v21 = vpack.c.bf16 %v205_v17, %v205_v17  ;;  %v236_v23 = vpack.c.bf16 %v204_v19, %v204_v19 }
  0x76   :  { %1502 = vmatmul.mubr.bf16.vlgmr.msra.gmra.mrb[8].mxu1 %v232_v40  ;;  %1869 = vmatpush3.bf16.msra.mxu0 %v2017_v31  ;;  %v235_v20 = vpack.c.bf16 %v203_v16, %v203_v16  ;;  %v234_v22 = vpack.c.bf16 %v202_v18, %v202_v18 }
  0x77   :  { %1891 = vmatpush3.bf16.msra.mxu1 %v2018_v34  ;;  %1870 = vmatprep.subr.bf16.mxu0 %v2019_v38 }
  0x78   :  { %1892 = vmatprep.subr.bf16.mxu1 %v2020_v41  ;;  %1541 = vmatprep.mubr.bf16.mxu0 %v235_v20 }
  0x79   :  { %1581 = vmatprep.mubr.bf16.mxu1 %v237_v21 }
  0x7a   :  { %1871 = vmatpush3.bf16.msra.mxu0 %v2021_v42 }
  0x7b   :  { %1893 = vmatpush3.bf16.msra.mxu1 %v2022_v43  ;;  %1872 = vmatprep.subr.bf16.mxu0 %v2023_v44 }
  0x7c   :  { %1894 = vmatprep.subr.bf16.mxu1 %v2024_v45 }
  0x7e   :  { %1873 = vmatpush3.bf16.msra.mxu0 %v2025_v46 }
  0x7f   :  { %1895 = vmatpush3.bf16.msra.mxu1 %v2026_v47  ;;  %1874 = vmatprep.subr.bf16.mxu0 %v2027_v48 }
  0x80   :  { %1896 = vmatprep.subr.bf16.mxu1 %v2028_v49 }
  0x82   :  { %1875 = vmatpush3.bf16.msra.mxu0 %v2029_v50 }
  0x83   :  { %1897 = vmatpush3.bf16.msra.mxu1 %v2030_v51  ;;  %1876 = vmatprep.subr.bf16.mxu0 %v2031_v52 }
  0x84   :  { %1898 = vmatprep.subr.bf16.mxu1 %v2032_v53 }
  0x86   :  { %1877 = vmatpush3.bf16.msra.mxu0 %v2033_v54 }
  0x87   :  { %1899 = vmatpush3.bf16.msra.mxu1 %v2034_v55  ;;  %1878 = vmatprep.subr.bf16.mxu0 %v2035_v56 }
  0x88   :  { %1900 = vmatprep.subr.bf16.mxu1 %v2036_v57 }
  0x8a   :  { %1879 = vmatpush3.bf16.msra.mxu0 %v2037_v58 }
  0x8b   :  { %1901 = vmatpush3.bf16.msra.mxu1 %v2038_v59  ;;  %1880 = vmatprep.subr.bf16.mxu0 %v2039_v60 }
  0x8c   :  { %1902 = vmatprep.subr.bf16.mxu1 %v2040_v61 }
  0x8e   :  { %1881 = vmatpush3.bf16.msra.mxu0 %v2041_v62 }
  0x8f   :  { %1903 = vmatpush3.bf16.msra.mxu1 %v2042_v63  ;;  %1882 = vmatprep.subr.bf16.mxu0 %v2043_v0 }
  0x90   :  { %1904 = vmatprep.subr.bf16.mxu1 %v2044_v1 }
  0x92   :  { %1883 = vmatpush3.bf16.msra.mxu0 %v2045_v8 }
  0x93   :  { %1905 = vmatpush3.bf16.msra.mxu1 %v2046_v11 }
  0x95   :  { %1542 = vmatmul.mubr.bf16.vlgmr.msra.gmra.mrb[12].mxu0 %v234_v22 }
  0x96   :  { %1582 = vmatmul.mubr.bf16.vlgmr.msra.gmra.mrb[12].mxu1 %v236_v23 }
 0x108   :  { %v1752_v24 = vpop.f32.mrb[0].mxu0 }
 0x109   :  { %v1774_v25 = vpop.f32.mrb[0].mxu1  ;;  %v1753_v26 = vpop.f32.mrb[1].mxu0 }
 0x10a   :  { %v1775_v27 = vpop.f32.mrb[1].mxu1  ;;  %v1754_v28 = vadd.f32 %v1753_v26, %v1752_v24  ;;  %v1755_v30 = vpop.f32.mrb[2].mxu0 }
 0x10b   :  { %v1776_v29 = vadd.f32 %v1775_v27, %v1774_v25  ;;  %v1777_v31 = vpop.f32.mrb[2].mxu1  ;;  %v1756_v32 = vpop.f32.mrb[3].mxu0 }
 0x10c   :  { %v1778_v33 = vpop.f32.mrb[3].mxu1  ;;  %v1304_v34 = vadd.f32 %v1754_v28, %v1607_v37 }
 0x10e   :  { %v1344_v35 = vadd.f32 %v1776_v29, %v1304_v34 }
 0x128   :  { %v1796_v36 = vpop.f32.mrb[4].mxu0 }
 0x129   :  { %v1818_v38 = vpop.f32.mrb[4].mxu1  ;;  %v1797_v39 = vpop.f32.mrb[5].mxu0 }
 0x12a   :  { %v1819_v40 = vpop.f32.mrb[5].mxu1  ;;  %v1798_v41 = vadd.f32 %v1797_v39, %v1796_v36  ;;  %v1799_v43 = vpop.f32.mrb[6].mxu0 }
 0x12b   :  { %v1820_v42 = vadd.f32 %v1819_v40, %v1818_v38  ;;  %v1821_v44 = vpop.f32.mrb[6].mxu1  ;;  %v1800_v45 = vpop.f32.mrb[7].mxu0 }
 0x12c   :  { %v1822_v46 = vpop.f32.mrb[7].mxu1  ;;  %v1384_v47 = vadd.f32 %v1798_v41, %v1344_v35 }
 0x12e   :  { %v1424_v48 = vadd.f32 %v1820_v42, %v1384_v47 }
 0x148   :  { %v1840_v49 = vpop.f32.mrb[8].mxu0 }
 0x149   :  { %v1862_v50 = vpop.f32.mrb[8].mxu1  ;;  %v1841_v51 = vpop.f32.mrb[9].mxu0 }
 0x14a   :  { %v1842_v52 = vadd.f32 %v1841_v51, %v1840_v49  ;;  %v1863_v53 = vpop.f32.mrb[9].mxu1  ;;  %v1843_v54 = vpop.f32.mrb[10].mxu0 }
 0x14b   :  { %v1864_v55 = vadd.f32 %v1863_v53, %v1862_v50  ;;  %v1865_v56 = vpop.f32.mrb[10].mxu1  ;;  %v1844_v57 = vpop.f32.mrb[11].mxu0 }
 0x14c   :  { %v1464_v58 = vadd.f32 %v1842_v52, %v1424_v48  ;;  %v1866_v59 = vpop.f32.mrb[11].mxu1 }
 0x14e   :  { %v1504_v60 = vadd.f32 %v1864_v55, %v1464_v58 }
 0x168   :  { %v1884_v61 = vpop.f32.mrb[12].mxu0 }
 0x169   :  { %v1906_v62 = vpop.f32.mrb[12].mxu1  ;;  %v1885_v63 = vpop.f32.mrb[13].mxu0 }
 0x16a   :  { %v1907_v0 = vpop.f32.mrb[13].mxu1  ;;  %v1886_v1 = vadd.f32 %v1885_v63, %v1884_v61  ;;  %v1887_v3 = vpop.f32.mrb[14].mxu0 }
 0x16b   :  { %v1908_v2 = vadd.f32 %v1907_v0, %v1906_v62  ;;  %v1909_v4 = vpop.f32.mrb[14].mxu1  ;;  %v1888_v5 = vpop.f32.mrb[15].mxu0 }
 0x16c   :  { %v1910_v6 = vpop.f32.mrb[15].mxu1  ;;  %v1544_v7 = vadd.f32 %v1886_v1, %v1504_v60 }
 0x16e   :  { %v1584_v8 = vadd.f32 %v1908_v2, %v1544_v7 }
 0x170   :  { %1589 = vst [vmem:[#allocation5] sm:$0xff] %v1584_v8 }
 0x171   :  { %1594 = vsyncadd [#allocation4], 96  ;;  %s2099_s2 = smov [#allocation5]  }
 0x172   :  { %s1595_s30 = sshll.u32 %s2099_s2, 4  ;;  %s1596_s30 = int_to_ptr.vmem [resolvable:$true] %s1595_s30 }
 0x173   :  { %s2069_s4 = scalar_lea.vmem %s1596_s30, 32  ;;  %s2073_s5 = scalar_lea.vmem %s1596_s30, 128 }
 0x174   :  { %p2070_p8 = scmp.ne.s32.totalorder %s1596_s30, %s2069_s4  ;;  %p2074_p9 = scmp.lt.s32.totalorder %s1596_s30, %s1596_s30 }
 0x175   :  { %p2075_p10 = scmp.lt.s32.totalorder %s2073_s5, %s2069_s4 }
 0x177   :  { %p2076_p11 = por %p2075_p10, %p2074_p9 }
 0x179   :  { %p2077_p12 = pnand %p2076_p11, %p2070_p8 }
 0x17b   :  { %2080 = shalt.err (!%p2077_p12)
}
 0x17c   :  { %s2081_s8 = scalar_lea.hbm %s2218_s3, 32 }
 0x17d   :  { %p2082_p13 = scmp.ne.s32.totalorder %s2218_s3, %s2081_s8  ;;  %p2085_p0 = scmp.lt.u32.totalorder %s2081_s8, %s2218_s3 }
 0x17f   :  { %p2087_p1 = pnand %p2085_p0, %p2082_p13 }
 0x181   :  { %2090 = shalt.err (!%p2087_p1)
}
 0x182   :  { %s2100_s13 = smov 32   ;;  %s2101_s14 = smov 2  }
 0x183   :  { %1601 = dma.vmem_to_hbm [thread:$0]  %s1596_s30, 32, %s2218_s3, [#allocation4], %s2100_s13, %s2100_s13, %s2101_s14  }
 0x184   :  { %2093 = dma.done.wait [#allocation4], 128  }
 0x185   :  { %2094 = vsyncadd [#allocation4], 4294967168 }
 0x186   :  { %1605 = vsyncpa [#allocation3], 1 }
 0x187   :  { %1606 = vsyncpa [#allocation4], 1 }

</bundles_post_ra>
